<compile_context>
chip_gen: v5e
topology: v5e:2x2
jax: 0.10.0
libtpu: 0.0.40
codegen_flags: <defaults>
</compile_context>

<pallas_src>
import jax
import jax.numpy as jnp
from jax.experimental import pallas as pl
from jax.experimental.pallas import tpu as pltpu

MAX_NUM_OF_J = 4
LANE = 128
SUBLANE = 8


def _round_up(x, m):
    return ((x + m - 1) // m) * m


def jcond_linear_kernel(cls_ref, w_ref, b_ref, out_ref):
    # Dropout(0.3) is identity in eval/inference mode.
    # TODO(synk): training-mode dropout (Bernoulli mask + 1/0.7 rescale) not implemented.
    acc = jnp.dot(cls_ref[...], w_ref[...], preferred_element_type=jnp.float32)
    j = out_ref.shape[1]                      # static: real number of J logits
    out_ref[...] = (acc + b_ref[...])[:, :j].astype(out_ref.dtype)


def jcond_forward(cls, w_p, b_p, *, num_j=MAX_NUM_OF_J, block_b=2048,
                  vmem_tile_budget=12 * 1024 * 1024):
    """cls: [B, H] (bf16 or f32); w_p: [H, 128] lane-padded weight (torch W.T padded);
    b_p: [1, 128] lane-padded f32 bias -> score [B, num_j] in cls.dtype."""
    B, H = cls.shape
    Jp = w_p.shape[1]
    out_dtype = cls.dtype
    in_itemsize = jnp.dtype(cls.dtype).itemsize
    out_itemsize = jnp.dtype(out_dtype).itemsize

    # Pad the batch only to the next multiple of 8 sublanes (and only if needed);
    # never to a multiple of the tile size (that would copy the whole [B,H] tensor).
    Bp = _round_up(B, SUBLANE)
    cls_in = cls if Bp == B else jnp.pad(cls, ((0, Bp - B), (0, 0)))

    # Batch tile: large enough to amortize the ~0.35us per-grid-step overhead, small
    # enough that double-buffered in/out tiles fit the default scoped VMEM everywhere
    # (v5e 16 MiB / v6e 32 MiB / v7x 32-of-64 MiB). Also keep >=2 grid steps when the
    # batch allows it so v7x's two TensorCores split the "parallel" axis.
    row_bytes = 2 * H * in_itemsize + 2 * num_j * out_itemsize   # double-buffered per-row
    tb = min(block_b,
             max(SUBLANE, vmem_tile_budget // row_bytes),
             _round_up(-(-Bp // 2), SUBLANE))
    tb = max(SUBLANE, (tb // SUBLANE) * SUBLANE)

    grid = (pl.cdiv(Bp, tb),)   # Pallas handles the ragged last block

    cost = pl.CostEstimate(
        flops=2 * B * H * Jp,
        transcendentals=0,
        bytes_accessed=(B * H * in_itemsize                      # cls read
                        + H * Jp * jnp.dtype(w_p.dtype).itemsize  # resident weight
                        + Jp * 4                                  # bias
                        + B * num_j * out_itemsize),              # unpadded writeback
    )

    out = pl.pallas_call(
        jcond_linear_kernel,
        out_shape=jax.ShapeDtypeStruct((Bp, num_j), out_dtype),
        grid_spec=pltpu.PrefetchScalarGridSpec(
            num_scalar_prefetch=0,
            grid=grid,
            in_specs=[
                pl.BlockSpec((tb, H), lambda i: (i, 0)),    # cls tile, pipelined
                pl.BlockSpec((H, Jp), lambda i: (0, 0)),    # weight, VMEM-resident
                pl.BlockSpec((1, Jp), lambda i: (0, 0)),    # bias, VMEM-resident
            ],
            out_specs=pl.BlockSpec((tb, num_j), lambda i: (i, 0)),  # narrow writeback
        ),
        compiler_params=pltpu.CompilerParams(
            dimension_semantics=("parallel",),  # megacore split on v7x; no-op on v5e/v6e
        ),
        cost_estimate=cost,
    )(cls_in, w_p, b_p)

    return out[:B]


def init_params(key, hidden, num_j=MAX_NUM_OF_J):
    # Mimic torch nn.Linear default init: U(-1/sqrt(fan_in), 1/sqrt(fan_in)).
    kw, kb = jax.random.split(key)
    bound = 1.0 / jnp.sqrt(float(hidden))
    w_t = jax.random.uniform(kw, (hidden, num_j), jnp.float32, -bound, bound)
    b = jax.random.uniform(kb, (num_j,), jnp.float32, -bound, bound)
    return w_t, b


def pad_params(w_t, b):
    """One-time lane padding of the tiny J dim (4 -> 128) for MXU alignment.
    Hoisted out of the per-call hot path."""
    H, J = w_t.shape
    Jp = _round_up(J, LANE)
    w_p = jnp.zeros((H, Jp), w_t.dtype).at[:, :J].set(w_t)
    b_p = jnp.zeros((1, Jp), jnp.float32).at[:, :J].set(
        jnp.reshape(b, (1, J)).astype(jnp.float32))
    return w_p, b_p


if __name__ == "__main__":
    key = jax.random.PRNGKey(0)
    k_cls, k_params = jax.random.split(key)

    batch = 2
    hidden = 32  # small stand-in for the default hidden=768

    # `cls` is what base_net(data_holder, X_id) would produce.
    cls = jax.random.normal(k_cls, (batch, hidden), jnp.float32)
    w_t, b = init_params(k_params, hidden, MAX_NUM_OF_J)
    w_p, b_p = pad_params(w_t, b)   # done once at init, not per forward call

    score = jcond_forward(cls, w_p, b_p, num_j=MAX_NUM_OF_J)
    jax.block_until_ready(score)

    # Reference check in plain JAX.
    ref = cls @ w_t + b.reshape(1, -1)
    assert score.shape == (batch, MAX_NUM_OF_J)
    assert score.dtype == cls.dtype
    assert jnp.allclose(score.astype(jnp.float32), ref, atol=1e-5, rtol=1e-5)

    print("KERNEL_OK")
</pallas_src>

<mosaic_0001>
module attributes {stable_mosaic.version = 11 : i64} {
  func.func @jcond_linear_kernel(%arg0: i32, %arg1: memref<8x32xf32, #tpu.memory_space<vmem>>, %arg2: memref<32x128xf32, #tpu.memory_space<vmem>>, %arg3: memref<1x128xf32, #tpu.memory_space<vmem>>, %arg4: memref<8x4xf32, #tpu.memory_space<vmem>>) attributes {dimension_semantics = [#tpu.dimension_semantics<parallel>], iteration_bounds = array<i64: 1>, scalar_prefetch = 0 : i64, scratch_operands = 0 : i64, tpu.core_type = #tpu.core_type<tc>, window_params = [{transform_indices = @transform_0, window_bounds = array<i64: 8, 32>}, {pipeline_mode = #tpu.pipeline_mode<synchronous>, transform_indices = @transform_1, window_bounds = array<i64: 32, 128>}, {pipeline_mode = #tpu.pipeline_mode<synchronous>, transform_indices = @transform_2, window_bounds = array<i64: 1, 128>}, {transform_indices = @transform_3, window_bounds = array<i64: 8, 4>}]} {
    %c0 = arith.constant 0 : index
    %c0_0 = arith.constant 0 : index
    %0 = vector.load %arg1[%c0, %c0_0] : memref<8x32xf32, #tpu.memory_space<vmem>>, vector<8x32xf32>
    %c0_1 = arith.constant 0 : index
    %c0_2 = arith.constant 0 : index
    %1 = vector.load %arg2[%c0_1, %c0_2] : memref<32x128xf32, #tpu.memory_space<vmem>>, vector<32x128xf32>
    %cst = arith.constant dense<0.000000e+00> : vector<8x128xf32>
    %2 = tpu.matmul %0, %1, %cst {dimension_numbers = #tpu.dot_dimension_numbers<[1], [0], [0], [1], [0, 0, 1, 1], [], []>} : vector<8x32xf32>, vector<32x128xf32>, vector<8x128xf32> -> vector<8x128xf32>
    %c0_3 = arith.constant 0 : index
    %c0_4 = arith.constant 0 : index
    %3 = vector.load %arg3[%c0_3, %c0_4] : memref<1x128xf32, #tpu.memory_space<vmem>>, vector<1x128xf32>
    %4 = vector.broadcast %3 : vector<1x128xf32> to vector<8x128xf32>
    %5 = arith.addf %2, %4 : vector<8x128xf32>
    %6 = vector.extract_strided_slice %5 {offsets = [0, 0], sizes = [8, 4], strides = [1, 1]} : vector<8x128xf32> to vector<8x4xf32>
    %c0_5 = arith.constant 0 : index
    %c0_6 = arith.constant 0 : index
    %7 = vector.load %arg4[%c0_5, %c0_6] : memref<8x4xf32, #tpu.memory_space<vmem>>, vector<8x4xf32>
    tpu.vector_store %arg4[%c0_5, %c0_6], %6 {strides = array<i32>} : memref<8x4xf32, #tpu.memory_space<vmem>>, vector<8x4xf32>,
    return
  }
  func.func @transform_0(%arg0: i32) -> (i32, i32) {
    %c0_i32 = arith.constant 0 : i32
    %c0_i32_0 = arith.constant 0 : i32
    return %arg0, %c0_i32 : i32, i32
  }
  func.func @transform_1(%arg0: i32) -> (i32, i32) {
    %c0_i32 = arith.constant 0 : i32
    %c0_i32_0 = arith.constant 0 : i32
    %c0_i32_1 = arith.constant 0 : i32
    return %c0_i32, %c0_i32_0 : i32, i32
  }
  func.func @transform_2(%arg0: i32) -> (i32, i32) {
    %c0_i32 = arith.constant 0 : i32
    %c0_i32_0 = arith.constant 0 : i32
    %c0_i32_1 = arith.constant 0 : i32
    return %c0_i32, %c0_i32_0 : i32, i32
  }
  func.func @transform_3(%arg0: i32) -> (i32, i32) {
    %c0_i32 = arith.constant 0 : i32
    %c0_i32_0 = arith.constant 0 : i32
    return %arg0, %c0_i32 : i32, i32
  }
}

</mosaic_0001>

<bundles_post_ra>
// kernel: tpu_custom_call.1
= control target key start
LH: loop header
LB: loop body
LE: loop exit
PB: predicated region body
PF: predicated region fallthrough
CT: control target
= control target key end

     0   :  { %8 = vsyncpa [#allocation3], 0  ;;  %s179_s0 = inlined_call_operand.hbm [shape: f32[8,32], index: 0, kind: input, shape index: {}]   ;;  %s180_s1 = inlined_call_operand.hbm [shape: f32[32,128], index: 1, kind: input, shape index: {}]   ;;  %s181_s2 = inlined_call_operand.vmem [shape: f32[1,128], index: 2, kind: input, shape index: {}]   ;;  %s182_s3 = inlined_call_operand.vmem [shape: f32[8,4], index: 3, kind: output, shape index: {}]  }
   0x1   :  { %s15_s14 = sshll.u32 %s179_s0, 4  ;;  %s16_s14 = int_to_ptr.hbm [resolvable:$true] %s15_s14 }
   0x2   :  { %9 = vsyncpa [#allocation5], 0  ;;  %s143_s15 = smov [#allocation2]   ;;  %s25_s19 = sshll.u32 %s180_s1, 4  ;;  %s26_s19 = int_to_ptr.hbm [resolvable:$true] %s25_s19 }
   0x3   :  { %s17_s16 = sshll.u32 %s143_s15, 4  ;;  %s144_s20 = smov [#allocation4]   ;;  %s18_s16 = int_to_ptr.vmem [resolvable:$true] %s17_s16 }
   0x4   :  { %20 = dma.hbm_to_vmem [thread:$0]  %s16_s14, 128, %s18_s16, [#allocation3]  }
   0x5   :  { %s27_s21 = sshll.u32 %s144_s20, 4  ;;  %s145_s22 = smov 128   ;;  %s28_s21 = int_to_ptr.vmem [resolvable:$true] %s27_s21 }
   0x6   :  { %s146_s23 = smov 8  }
   0x7   :  { %33 = dma.hbm_to_vmem [thread:$0]  %s26_s19, 512, %s28_s21, [#allocation5], %s145_s22, %s145_s22, %s146_s23  }
   0x8   :  { %139 = dma.done.wait [#allocation3], 128  }
   0x9   :  { %140 = vsyncadd [#allocation3], 4294967168 }
   0xa   :  { %141 = dma.done.wait [#allocation5], 512  }
   0xb   :  { %142 = vsyncadd [#allocation5], 4294966784  ;;  %v48_v0 = vld [vmem:[#allocation4 + $0x18] sm:$0xff]  ;;  %v47_v1 = vld [vmem:[#allocation4 + $0x10] sm:$0xff]  ;;  %vm53_vm0 = vcmask 261120   ;;  %vm77_vm1 = vcmask 31744  }
   0xc   :  { %69 = vmatpush.msra.mxu0 %v48_v0  ;;  %v46_v2 = vld [vmem:[#allocation4 + $0x8] sm:$0xff]  ;;  %v45_v3 = vld [vmem:[#allocation4] sm:$0xff]  ;;  %v44_v4 = vld [vmem:[#allocation2] sm:$0xff] }
   0xd   :  { %v90_v5 = vld [vmem:[%s181_s2] ss:$0 sm:$0xff] }
   0xe   :  { %70 = vmatpush.msra.mxu0 %v47_v1 }
  0x10   :  { %71 = vmatpush.msra.mxu0 %v46_v2 }
  0x12   :  { %72 = vmatpush.msra.mxu0 %v45_v3 }
  0x13   :  { %85 = vmatmul.msk.f32.vlgmr.msra.gmra.mxu0 %vm53_vm0, %v44_v4 }
  0x90   :  { %v74_v6 = vpop.f32.mrf.mxu0 }
  0x91   :  { %v75_v7 = vadd.f32 %v90_v5, %v74_v6 }
  0x93   :  { %78 = vst.msk [vmem:[%s182_s3] sm:$0xff] %vm77_vm1, %v75_v7 }
  0x94   :  { %83 = vsyncpa [#allocation3], 1 }
  0x95   :  { %84 = vsyncpa [#allocation5], 1 }

</bundles_post_ra>
